<compile_context>
chip_gen: v5e
topology: v5e:2x2
jax: 0.10.0
libtpu: 0.0.40
codegen_flags: <defaults>
</compile_context>

<pallas_src>
import functools

import jax
import jax.numpy as jnp
from jax import lax
from jax.experimental import pallas as pl
from jax.experimental.pallas import tpu as pltpu

EPS = 1e-5


def _kernel(xpad_ref, x2_ref, mask_ref, w3_ref, sin_ref, sint_ref, smat_ref,
            st_ref, wrep_ref, biasf_ref, bnin_ref, tail_ref, out_ref,
            *, H, W, C):
    f32 = jnp.float32
    B = xpad_ref.shape[0]
    KW = (W + 2) * C
    n = float(B * H * W)

    # ---------------- input BatchNorm (training mode) --------------------
    # Single pass: sum and sum-of-squares.  Spatial padding zeros contribute
    # nothing, so dividing by B*H*W is exact.  Per-channel reductions and
    # broadcasts in the fused-lane layout are tiny constant matmuls (MXU).
    xp = xpad_ref[...]                                     # (B, H+2, KW) f32
    col_s = jnp.sum(xp, axis=(0, 1)).reshape(1, KW)
    col_q = jnp.sum(xp * xp, axis=(0, 1)).reshape(1, KW)
    s1 = jnp.dot(col_s, sin_ref[...], preferred_element_type=f32)   # (1, C)
    s2 = jnp.dot(col_q, sin_ref[...], preferred_element_type=f32)   # (1, C)
    mean = s1 / n
    var = s2 / n - mean * mean                             # biased variance
    scale = bnin_ref[0:1, :] * lax.rsqrt(var + EPS)
    shift = bnin_ref[1:2, :] - mean * scale
    scale_f = jnp.dot(scale, sint_ref[...], preferred_element_type=f32)  # (1,KW)
    shift_f = jnp.dot(shift, sint_ref[...], preferred_element_type=f32)

    # Halo handling: xp is exactly zero at halo rows/cols, so only the shift
    # term could make them nonzero — mask it with the precomputed 0/1 mask.
    shift_2d = shift_f * mask_ref[...]                     # (H+2, KW)
    act = jnp.maximum(xp * scale_f.reshape(1, 1, KW) + shift_2d[None], 0.0)

    # ------------- fused 3x3 convs: 3 bf16 matmuls, K = (W+2)*C -----------
    NOUT = w3_ref.shape[2]                                 # W * COUT

    def lhs(dy):  # (B*H, KW) bf16 slice of the padded activation
        return act[:, dy:dy + H, :].reshape(B * H, KW).astype(jnp.bfloat16)

    conv = biasf_ref[...] + jnp.dot(lhs(0), w3_ref[0],
                                    preferred_element_type=f32)
    conv = conv + jnp.dot(lhs(1), w3_ref[1], preferred_element_type=f32)
    conv = conv + jnp.dot(lhs(2), w3_ref[2], preferred_element_type=f32)

    # ------------- attention head: BN -> ReLU -> fused 1x1 conv ----------
    cs = jnp.sum(conv, axis=0, keepdims=True)              # (1, W*COUT)
    cq = jnp.sum(conv * conv, axis=0, keepdims=True)
    a1 = jnp.dot(cs, smat_ref[...], preferred_element_type=f32)     # (1, COUT)
    a2 = jnp.dot(cq, smat_ref[...], preferred_element_type=f32)
    mean_a = a1 / n
    var_a = a2 / n - mean_a * mean_a
    scale_a = tail_ref[0:1, :] * lax.rsqrt(var_a + EPS)
    shift_a = tail_ref[1:2, :] - mean_a * scale_a
    bb = tail_ref[2:3, 0:1]                                # scalar conv bias
    scale_af = jnp.dot(scale_a, st_ref[...], preferred_element_type=f32)
    shift_af = jnp.dot(shift_a, st_ref[...], preferred_element_type=f32)
    aa = jnp.maximum(conv * scale_af + shift_af, 0.0)

    # wrep = (waf @ rep): 1x1 conv + channel-replication fused into one
    # (W*COUT, W*Cdec) matmul; bias folds through (rep columns sum to 1).
    attn_rep = jnp.dot(aa, wrep_ref[...], preferred_element_type=f32) + bb

    out_ref[...] = attn_rep * x2_ref[...]                  # lane-dense store


def build_constants(params, H, W, C_enc, C_dec):
    """One-time construction of all layout/weight constants (not per-call)."""
    f32 = jnp.float32
    C = C_enc + C_dec
    KW = (W + 2) * C
    w1, w2 = params["w1"].astype(f32), params["w2"].astype(f32)
    COUT = w1.shape[-1]

    # block-banded weights: w3[dy, w'*C+ci, x*COUT+co] = wcat[dy, w'-x, ci, co]
    wcat = jnp.concatenate([w1, w2], axis=2)                         # (3,3,C,COUT)
    dxs = jnp.arange(3)[:, None, None]
    wps = jnp.arange(W + 2)[None, :, None]
    xs = jnp.arange(W)[None, None, :]
    sel = (wps == xs + dxs).astype(f32)                              # (3, W+2, W)
    w3 = jnp.einsum("awx,daco->dwcxo", sel, wcat).reshape(3, KW, W * COUT)
    w3 = w3.astype(jnp.bfloat16)                                     # bf16 DMA+MXU

    # constant per-channel selection / broadcast matrices (fused-lane layout)
    sin = jnp.tile(jnp.eye(C, dtype=f32), (W + 2, 1))                # (KW, C)
    sint = jnp.tile(jnp.eye(C, dtype=f32), (1, W + 2))               # (C, KW)
    smat = jnp.tile(jnp.eye(COUT, dtype=f32), (W, 1))                # (W*COUT, COUT)
    st = jnp.tile(jnp.eye(COUT, dtype=f32), (1, W))                  # (COUT, W*COUT)

    # fused 1x1-conv + channel replication
    waf = jnp.kron(jnp.eye(W, dtype=f32), params["wa"].astype(f32))  # (W*COUT, W)
    rep = jnp.kron(jnp.eye(W, dtype=f32), jnp.ones((1, C_dec), f32)) # (W, W*Cdec)
    wrep = waf @ rep                                                 # (W*COUT, W*Cdec)

    biasf = jnp.tile((params["b1"] + params["b2"]).astype(f32), (1, W))
    bnin = jnp.concatenate(
        [jnp.concatenate([params["g1"], params["g2"]], axis=1),
         jnp.concatenate([params["be1"], params["be2"]], axis=1)],
        axis=0).astype(f32)                                          # (2, C)
    tail = jnp.concatenate(
        [params["ga"], params["ba"],
         jnp.broadcast_to(params["bb"], (1, COUT))], axis=0).astype(f32)  # (3, COUT)

    # 0/1 halo mask on the padded (row, fused-lane) plane
    rows = (jnp.arange(H + 2) >= 1) & (jnp.arange(H + 2) <= H)
    lanes = (jnp.arange(KW) >= C) & (jnp.arange(KW) < (W + 1) * C)
    mask = (rows[:, None] & lanes[None, :]).astype(f32)              # (H+2, KW)

    return dict(w3=w3, sin=sin, sint=sint, smat=smat, st=st, wrep=wrep,
                biasf=biasf, bnin=bnin, tail=tail, mask=mask)


@jax.jit
def cross_attention_block(x1_nchw, x2_nchw, consts):
    """x1: (B, C_enc, H, W), x2: (B, C_dec, H, W) -> (B, C_dec, H, W)."""
    f32 = jnp.float32
    x1 = jnp.transpose(x1_nchw, (0, 2, 3, 1)).astype(f32)   # NHWC
    x2 = jnp.transpose(x2_nchw, (0, 2, 3, 1)).astype(f32)
    B, H, W, C1 = x1.shape
    C2 = x2.shape[-1]
    C = C1 + C2

    # fuse the two branches; spatially pre-pad; lane-fuse (w, c) -> w*C + c
    xcat = jnp.concatenate([x1, x2], axis=-1)                        # (B,H,W,C)
    xpad = jnp.pad(xcat, ((0, 0), (1, 1), (1, 1), (0, 0)))
    xpad = xpad.reshape(B, H + 2, (W + 2) * C)
    x2f = x2.reshape(B * H, W * C2)

    inputs = (xpad, x2f, consts["mask"], consts["w3"], consts["sin"],
              consts["sint"], consts["smat"], consts["st"], consts["wrep"],
              consts["biasf"], consts["bnin"], consts["tail"])

    def full_spec(a):
        nd = a.ndim
        return pl.BlockSpec(a.shape, lambda i, _nd=nd: (0,) * _nd)

    out_flat = pl.pallas_call(
        functools.partial(_kernel, H=H, W=W, C=C),
        out_shape=jax.ShapeDtypeStruct((B * H, W * C2), jnp.float32),
        grid_spec=pltpu.PrefetchScalarGridSpec(
            num_scalar_prefetch=0,
            grid=(1,),
            in_specs=[full_spec(a) for a in inputs],
            out_specs=pl.BlockSpec((B * H, W * C2), lambda i: (0, 0))),
        compiler_params=pltpu.CompilerParams(
            dimension_semantics=("arbitrary",)),
    )(*inputs)

    out_nhwc = out_flat.reshape(B, H, W, C2)
    return jnp.transpose(out_nhwc, (0, 3, 1, 2))            # back to NCHW


def _reference_nchw(x1_nchw, x2_nchw, p):
    """Pure-JAX reference (XLA convs), training-mode BN, NCHW boundary."""
    x1 = jnp.transpose(x1_nchw, (0, 2, 3, 1)).astype(jnp.float32)
    x2 = jnp.transpose(x2_nchw, (0, 2, 3, 1)).astype(jnp.float32)

    def bn_relu(x, g, b):
        m = jnp.mean(x, axis=(0, 1, 2))
        v = jnp.mean((x - m) ** 2, axis=(0, 1, 2))
        return jnp.maximum((x - m) * lax.rsqrt(v + EPS) * g + b, 0.0)

    dn = ("NHWC", "HWIO", "NHWC")
    a1 = bn_relu(x1, p["g1"], p["be1"])
    a2 = bn_relu(x2, p["g2"], p["be2"])
    c1 = lax.conv_general_dilated(a1, p["w1"], (1, 1), "SAME",
                                  dimension_numbers=dn) + p["b1"]
    c2 = lax.conv_general_dilated(a2, p["w2"], (1, 1), "SAME",
                                  dimension_numbers=dn) + p["b2"]
    out = c1 + c2
    aa = bn_relu(out, p["ga"], p["ba"])
    Cout = p["wa"].shape[0]
    attn = lax.conv_general_dilated(aa, p["wa"].reshape(1, 1, Cout, 1),
                                    (1, 1), "SAME",
                                    dimension_numbers=dn) + p["bb"]
    y = attn * x2
    return jnp.transpose(y, (0, 3, 1, 2))


if __name__ == "__main__":
    key = jax.random.PRNGKey(0)
    B, H, W = 2, 16, 16
    C_enc, C_dec, C_out = 4, 8, 8   # input_encoder, input_decoder, output_dim

    ks = jax.random.split(key, 14)
    x1 = jax.random.normal(ks[0], (B, C_enc, H, W), jnp.float32)
    x2 = jax.random.normal(ks[1], (B, C_dec, H, W), jnp.float32)

    params = dict(
        # BatchNorm affine params (gamma, beta), per branch
        g1=jax.random.uniform(ks[2], (1, C_enc), jnp.float32, 0.5, 1.5),
        be1=0.1 * jax.random.normal(ks[3], (1, C_enc), dtype=jnp.float32),
        g2=jax.random.uniform(ks[4], (1, C_dec), jnp.float32, 0.5, 1.5),
        be2=0.1 * jax.random.normal(ks[5], (1, C_dec), dtype=jnp.float32),
        # 3x3 conv weights (HWIO) and biases
        w1=0.1 * jax.random.normal(ks[6], (3, 3, C_enc, C_out), dtype=jnp.float32),
        b1=0.1 * jax.random.normal(ks[7], (1, C_out), dtype=jnp.float32),
        w2=0.1 * jax.random.normal(ks[8], (3, 3, C_dec, C_out), dtype=jnp.float32),
        b2=0.1 * jax.random.normal(ks[9], (1, C_out), dtype=jnp.float32),
        # conv_attn: BN affine + 1x1 conv (C_out -> 1)
        ga=jax.random.uniform(ks[10], (1, C_out), jnp.float32, 0.5, 1.5),
        ba=0.1 * jax.random.normal(ks[11], (1, C_out), dtype=jnp.float32),
        wa=0.1 * jax.random.normal(ks[12], (C_out, 1), dtype=jnp.float32),
        bb=0.1 * jax.random.normal(ks[13], (1, 1), dtype=jnp.float32),
    )

    # one-time constant construction (hoisted out of the per-call path)
    consts = build_constants(params, H, W, C_enc, C_dec)
    consts = jax.tree_util.tree_map(jax.block_until_ready, consts)

    out = cross_attention_block(x1, x2, consts)
    out = jax.block_until_ready(out)

    ref = _reference_nchw(x1, x2, params)
    assert out.shape == (B, C_dec, H, W), out.shape
    # Tolerance accounts for bf16 MXU operands on the conv path (per perf
    # review); BN statistics and all elementwise math remain f32.  Observed
    # max abs error at these O(1) magnitudes is well below 1e-2.
    err = float(jnp.max(jnp.abs(out - ref)))
    assert jnp.allclose(out, ref, atol=1e-2, rtol=1e-2), err

    print("KERNEL_OK")
</pallas_src>

<mosaic_0001>
module attributes {stable_mosaic.version = 11 : i64} {
  func.func @_kernel(%arg0: i32, %arg1: memref<2x18x216xf32, #tpu.memory_space<vmem>>, %arg2: memref<32x128xf32, #tpu.memory_space<vmem>>, %arg3: memref<18x216xf32, #tpu.memory_space<vmem>>, %arg4: memref<3x216x128xbf16, #tpu.memory_space<vmem>>, %arg5: memref<216x12xf32, #tpu.memory_space<vmem>>, %arg6: memref<12x216xf32, #tpu.memory_space<vmem>>, %arg7: memref<128x8xf32, #tpu.memory_space<vmem>>, %arg8: memref<8x128xf32, #tpu.memory_space<vmem>>, %arg9: memref<128x128xf32, #tpu.memory_space<vmem>>, %arg10: memref<1x128xf32, #tpu.memory_space<vmem>>, %arg11: memref<2x12xf32, #tpu.memory_space<vmem>>, %arg12: memref<3x8xf32, #tpu.memory_space<vmem>>, %arg13: memref<32x128xf32, #tpu.memory_space<vmem>>) attributes {dimension_semantics = [#tpu.dimension_semantics<arbitrary>], iteration_bounds = array<i64: 1>, scalar_prefetch = 0 : i64, scratch_operands = 0 : i64, tpu.core_type = #tpu.core_type<tc>, window_params = [{pipeline_mode = #tpu.pipeline_mode<synchronous>, transform_indices = @transform_0, window_bounds = array<i64: 2, 18, 216>}, {pipeline_mode = #tpu.pipeline_mode<synchronous>, transform_indices = @transform_1, window_bounds = array<i64: 32, 128>}, {pipeline_mode = #tpu.pipeline_mode<synchronous>, transform_indices = @transform_2, window_bounds = array<i64: 18, 216>}, {pipeline_mode = #tpu.pipeline_mode<synchronous>, transform_indices = @transform_3, window_bounds = array<i64: 3, 216, 128>}, {pipeline_mode = #tpu.pipeline_mode<synchronous>, transform_indices = @transform_4, window_bounds = array<i64: 216, 12>}, {pipeline_mode = #tpu.pipeline_mode<synchronous>, transform_indices = @transform_5, window_bounds = array<i64: 12, 216>}, {pipeline_mode = #tpu.pipeline_mode<synchronous>, transform_indices = @transform_6, window_bounds = array<i64: 128, 8>}, {pipeline_mode = #tpu.pipeline_mode<synchronous>, transform_indices = @transform_7, window_bounds = array<i64: 8, 128>}, {pipeline_mode = #tpu.pipeline_mode<synchronous>, transform_indices = @transform_8, window_bounds = array<i64: 128, 128>}, {pipeline_mode = #tpu.pipeline_mode<synchronous>, transform_indices = @transform_9, window_bounds = array<i64: 1, 128>}, {pipeline_mode = #tpu.pipeline_mode<synchronous>, transform_indices = @transform_10, window_bounds = array<i64: 2, 12>}, {pipeline_mode = #tpu.pipeline_mode<synchronous>, transform_indices = @transform_11, window_bounds = array<i64: 3, 8>}, {pipeline_mode = #tpu.pipeline_mode<synchronous>, transform_indices = @transform_12, window_bounds = array<i64: 32, 128>}]} {
    %c0 = arith.constant 0 : index
    %c0_0 = arith.constant 0 : index
    %c0_1 = arith.constant 0 : index
    %0 = vector.load %arg1[%c0, %c0_0, %c0_1] : memref<2x18x216xf32, #tpu.memory_space<vmem>>, vector<2x18x216xf32>
    %cst = arith.constant dense<0.000000e+00> : vector<216xf32>
    %1 = vector.multi_reduction <add>, %0, %cst [0, 1] : vector<2x18x216xf32> to vector<216xf32>
    %2 = vector.shape_cast %1 : vector<216xf32> to vector<1x216xf32>
    %3 = arith.mulf %0, %0 : vector<2x18x216xf32>
    %cst_2 = arith.constant dense<0.000000e+00> : vector<216xf32>
    %4 = vector.multi_reduction <add>, %3, %cst_2 [0, 1] : vector<2x18x216xf32> to vector<216xf32>
    %5 = vector.shape_cast %4 : vector<216xf32> to vector<1x216xf32>
    %c0_3 = arith.constant 0 : index
    %c0_4 = arith.constant 0 : index
    %6 = vector.load %arg5[%c0_3, %c0_4] : memref<216x12xf32, #tpu.memory_space<vmem>>, vector<216x12xf32>
    %cst_5 = arith.constant dense<0.000000e+00> : vector<1x12xf32>
    %7 = tpu.matmul %2, %6, %cst_5 {dimension_numbers = #tpu.dot_dimension_numbers<[1], [0], [0], [1], [0, 0, 1, 1], [], []>} : vector<1x216xf32>, vector<216x12xf32>, vector<1x12xf32> -> vector<1x12xf32>
    %c0_6 = arith.constant 0 : index
    %c0_7 = arith.constant 0 : index
    %8 = vector.load %arg5[%c0_6, %c0_7] : memref<216x12xf32, #tpu.memory_space<vmem>>, vector<216x12xf32>
    %cst_8 = arith.constant dense<0.000000e+00> : vector<1x12xf32>
    %9 = tpu.matmul %5, %8, %cst_8 {dimension_numbers = #tpu.dot_dimension_numbers<[1], [0], [0], [1], [0, 0, 1, 1], [], []>} : vector<1x216xf32>, vector<216x12xf32>, vector<1x12xf32> -> vector<1x12xf32>
    %cst_9 = arith.constant 5.120000e+02 : f32
    %10 = vector.broadcast %cst_9 : f32 to vector<1x12xf32>
    %11 = arith.divf %7, %10 : vector<1x12xf32>
    %cst_10 = arith.constant 5.120000e+02 : f32
    %12 = vector.broadcast %cst_10 : f32 to vector<1x12xf32>
    %13 = arith.divf %9, %12 : vector<1x12xf32>
    %14 = arith.mulf %11, %11 : vector<1x12xf32>
    %15 = arith.subf %13, %14 : vector<1x12xf32>
    %c0_11 = arith.constant 0 : index
    %c0_12 = arith.constant 0 : index
    %16 = vector.load %arg11[%c0_11, %c0_12] : memref<2x12xf32, #tpu.memory_space<vmem>>, vector<1x12xf32>
    %cst_13 = arith.constant 9.99999974E-6 : f32
    %17 = vector.broadcast %cst_13 : f32 to vector<1x12xf32>
    %18 = arith.addf %15, %17 : vector<1x12xf32>
    %19 = math.rsqrt %18 : vector<1x12xf32>
    %20 = arith.mulf %16, %19 : vector<1x12xf32>
    %c1 = arith.constant 1 : index
    %c0_14 = arith.constant 0 : index
    %21 = vector.load %arg11[%c1, %c0_14] : memref<2x12xf32, #tpu.memory_space<vmem>>, vector<1x12xf32>
    %22 = arith.mulf %11, %20 : vector<1x12xf32>
    %23 = arith.subf %21, %22 : vector<1x12xf32>
    %c0_15 = arith.constant 0 : index
    %c0_16 = arith.constant 0 : index
    %24 = vector.load %arg6[%c0_15, %c0_16] : memref<12x216xf32, #tpu.memory_space<vmem>>, vector<12x216xf32>
    %cst_17 = arith.constant dense<0.000000e+00> : vector<1x216xf32>
    %25 = tpu.matmul %20, %24, %cst_17 {dimension_numbers = #tpu.dot_dimension_numbers<[1], [0], [0], [1], [0, 0, 1, 1], [], []>} : vector<1x12xf32>, vector<12x216xf32>, vector<1x216xf32> -> vector<1x216xf32>
    %c0_18 = arith.constant 0 : index
    %c0_19 = arith.constant 0 : index
    %26 = vector.load %arg6[%c0_18, %c0_19] : memref<12x216xf32, #tpu.memory_space<vmem>>, vector<12x216xf32>
    %cst_20 = arith.constant dense<0.000000e+00> : vector<1x216xf32>
    %27 = tpu.matmul %23, %26, %cst_20 {dimension_numbers = #tpu.dot_dimension_numbers<[1], [0], [0], [1], [0, 0, 1, 1], [], []>} : vector<1x12xf32>, vector<12x216xf32>, vector<1x216xf32> -> vector<1x216xf32>
    %c0_21 = arith.constant 0 : index
    %c0_22 = arith.constant 0 : index
    %28 = vector.load %arg3[%c0_21, %c0_22] : memref<18x216xf32, #tpu.memory_space<vmem>>, vector<18x216xf32>
    %29 = vector.broadcast %27 : vector<1x216xf32> to vector<18x216xf32>
    %30 = arith.mulf %29, %28 : vector<18x216xf32>
    %31 = vector.shape_cast %25 : vector<1x216xf32> to vector<1x1x216xf32>
    %32 = vector.broadcast %31 : vector<1x1x216xf32> to vector<2x18x216xf32>
    %33 = arith.mulf %0, %32 : vector<2x18x216xf32>
    %34 = vector.shape_cast %30 : vector<18x216xf32> to vector<1x18x216xf32>
    %35 = vector.broadcast %34 : vector<1x18x216xf32> to vector<2x18x216xf32>
    %36 = arith.addf %33, %35 : vector<2x18x216xf32>
    %cst_23 = arith.constant 0.000000e+00 : f32
    %37 = vector.broadcast %cst_23 : f32 to vector<2x18x216xf32>
    %38 = arith.maximumf %36, %37 : vector<2x18x216xf32>
    %c0_24 = arith.constant 0 : index
    %c0_25 = arith.constant 0 : index
    %39 = vector.load %arg10[%c0_24, %c0_25] : memref<1x128xf32, #tpu.memory_space<vmem>>, vector<1x128xf32>
    %40 = vector.extract_strided_slice %38 {offsets = [0, 0, 0], sizes = [2, 16, 216], strides = [1, 1, 1]} : vector<2x18x216xf32> to vector<2x16x216xf32>
    %41 = vector.shape_cast %40 : vector<2x16x216xf32> to vector<32x216xf32>
    %42 = arith.truncf %41 : vector<32x216xf32> to vector<32x216xbf16>
    %c0_26 = arith.constant 0 : index
    %c0_27 = arith.constant 0 : index
    %c0_28 = arith.constant 0 : index
    %43 = vector.load %arg4[%c0_26, %c0_27, %c0_28] : memref<3x216x128xbf16, #tpu.memory_space<vmem>>, vector<1x216x128xbf16>
    %44 = vector.shape_cast %43 : vector<1x216x128xbf16> to vector<216x128xbf16>
    %cst_29 = arith.constant dense<0.000000e+00> : vector<32x128xf32>
    %45 = tpu.matmul %42, %44, %cst_29 {dimension_numbers = #tpu.dot_dimension_numbers<[1], [0], [0], [1], [0, 0, 1, 1], [], []>} : vector<32x216xbf16>, vector<216x128xbf16>, vector<32x128xf32> -> vector<32x128xf32>
    %46 = vector.broadcast %39 : vector<1x128xf32> to vector<32x128xf32>
    %47 = arith.addf %46, %45 : vector<32x128xf32>
    %48 = vector.extract_strided_slice %38 {offsets = [0, 1, 0], sizes = [2, 16, 216], strides = [1, 1, 1]} : vector<2x18x216xf32> to vector<2x16x216xf32>
    %49 = vector.shape_cast %48 : vector<2x16x216xf32> to vector<32x216xf32>
    %50 = arith.truncf %49 : vector<32x216xf32> to vector<32x216xbf16>
    %c1_30 = arith.constant 1 : index
    %c0_31 = arith.constant 0 : index
    %c0_32 = arith.constant 0 : index
    %51 = vector.load %arg4[%c1_30, %c0_31, %c0_32] : memref<3x216x128xbf16, #tpu.memory_space<vmem>>, vector<1x216x128xbf16>
    %52 = vector.shape_cast %51 : vector<1x216x128xbf16> to vector<216x128xbf16>
    %cst_33 = arith.constant dense<0.000000e+00> : vector<32x128xf32>
    %53 = tpu.matmul %50, %52, %cst_33 {dimension_numbers = #tpu.dot_dimension_numbers<[1], [0], [0], [1], [0, 0, 1, 1], [], []>} : vector<32x216xbf16>, vector<216x128xbf16>, vector<32x128xf32> -> vector<32x128xf32>
    %54 = arith.addf %47, %53 : vector<32x128xf32>
    %55 = vector.extract_strided_slice %38 {offsets = [0, 2, 0], sizes = [2, 16, 216], strides = [1, 1, 1]} : vector<2x18x216xf32> to vector<2x16x216xf32>
    %56 = vector.shape_cast %55 : vector<2x16x216xf32> to vector<32x216xf32>
    %57 = arith.truncf %56 : vector<32x216xf32> to vector<32x216xbf16>
    %c2 = arith.constant 2 : index
    %c0_34 = arith.constant 0 : index
    %c0_35 = arith.constant 0 : index
    %58 = vector.load %arg4[%c2, %c0_34, %c0_35] : memref<3x216x128xbf16, #tpu.memory_space<vmem>>, vector<1x216x128xbf16>
    %59 = vector.shape_cast %58 : vector<1x216x128xbf16> to vector<216x128xbf16>
    %cst_36 = arith.constant dense<0.000000e+00> : vector<32x128xf32>
    %60 = tpu.matmul %57, %59, %cst_36 {dimension_numbers = #tpu.dot_dimension_numbers<[1], [0], [0], [1], [0, 0, 1, 1], [], []>} : vector<32x216xbf16>, vector<216x128xbf16>, vector<32x128xf32> -> vector<32x128xf32>
    %61 = arith.addf %54, %60 : vector<32x128xf32>
    %cst_37 = arith.constant dense<0.000000e+00> : vector<128xf32>
    %62 = vector.multi_reduction <add>, %61, %cst_37 [0] : vector<32x128xf32> to vector<128xf32>
    %63 = vector.shape_cast %62 : vector<128xf32> to vector<1x128xf32>
    %64 = arith.mulf %61, %61 : vector<32x128xf32>
    %cst_38 = arith.constant dense<0.000000e+00> : vector<128xf32>
    %65 = vector.multi_reduction <add>, %64, %cst_38 [0] : vector<32x128xf32> to vector<128xf32>
    %66 = vector.shape_cast %65 : vector<128xf32> to vector<1x128xf32>
    %c0_39 = arith.constant 0 : index
    %c0_40 = arith.constant 0 : index
    %67 = vector.load %arg7[%c0_39, %c0_40] : memref<128x8xf32, #tpu.memory_space<vmem>>, vector<128x8xf32>
    %cst_41 = arith.constant dense<0.000000e+00> : vector<1x8xf32>
    %68 = tpu.matmul %63, %67, %cst_41 {dimension_numbers = #tpu.dot_dimension_numbers<[1], [0], [0], [1], [0, 0, 1, 1], [], []>} : vector<1x128xf32>, vector<128x8xf32>, vector<1x8xf32> -> vector<1x8xf32>
    %c0_42 = arith.constant 0 : index
    %c0_43 = arith.constant 0 : index
    %69 = vector.load %arg7[%c0_42, %c0_43] : memref<128x8xf32, #tpu.memory_space<vmem>>, vector<128x8xf32>
    %cst_44 = arith.constant dense<0.000000e+00> : vector<1x8xf32>
    %70 = tpu.matmul %66, %69, %cst_44 {dimension_numbers = #tpu.dot_dimension_numbers<[1], [0], [0], [1], [0, 0, 1, 1], [], []>} : vector<1x128xf32>, vector<128x8xf32>, vector<1x8xf32> -> vector<1x8xf32>
    %cst_45 = arith.constant 5.120000e+02 : f32
    %71 = vector.broadcast %cst_45 : f32 to vector<1x8xf32>
    %72 = arith.divf %68, %71 : vector<1x8xf32>
    %cst_46 = arith.constant 5.120000e+02 : f32
    %73 = vector.broadcast %cst_46 : f32 to vector<1x8xf32>
    %74 = arith.divf %70, %73 : vector<1x8xf32>
    %75 = arith.mulf %72, %72 : vector<1x8xf32>
    %76 = arith.subf %74, %75 : vector<1x8xf32>
    %c0_47 = arith.constant 0 : index
    %c0_48 = arith.constant 0 : index
    %77 = vector.load %arg12[%c0_47, %c0_48] : memref<3x8xf32, #tpu.memory_space<vmem>>, vector<1x8xf32>
    %cst_49 = arith.constant 9.99999974E-6 : f32
    %78 = vector.broadcast %cst_49 : f32 to vector<1x8xf32>
    %79 = arith.addf %76, %78 : vector<1x8xf32>
    %80 = math.rsqrt %79 : vector<1x8xf32>
    %81 = arith.mulf %77, %80 : vector<1x8xf32>
    %c1_50 = arith.constant 1 : index
    %c0_51 = arith.constant 0 : index
    %82 = vector.load %arg12[%c1_50, %c0_51] : memref<3x8xf32, #tpu.memory_space<vmem>>, vector<1x8xf32>
    %83 = arith.mulf %72, %81 : vector<1x8xf32>
    %84 = arith.subf %82, %83 : vector<1x8xf32>
    %c2_52 = arith.constant 2 : index
    %c0_53 = arith.constant 0 : index
    %85 = vector.load %arg12[%c2_52, %c0_53] : memref<3x8xf32, #tpu.memory_space<vmem>>, vector<1x1xf32>
    %c0_54 = arith.constant 0 : index
    %c0_55 = arith.constant 0 : index
    %86 = vector.load %arg8[%c0_54, %c0_55] : memref<8x128xf32, #tpu.memory_space<vmem>>, vector<8x128xf32>
    %cst_56 = arith.constant dense<0.000000e+00> : vector<1x128xf32>
    %87 = tpu.matmul %81, %86, %cst_56 {dimension_numbers = #tpu.dot_dimension_numbers<[1], [0], [0], [1], [0, 0, 1, 1], [], []>} : vector<1x8xf32>, vector<8x128xf32>, vector<1x128xf32> -> vector<1x128xf32>
    %c0_57 = arith.constant 0 : index
    %c0_58 = arith.constant 0 : index
    %88 = vector.load %arg8[%c0_57, %c0_58] : memref<8x128xf32, #tpu.memory_space<vmem>>, vector<8x128xf32>
    %cst_59 = arith.constant dense<0.000000e+00> : vector<1x128xf32>
    %89 = tpu.matmul %84, %88, %cst_59 {dimension_numbers = #tpu.dot_dimension_numbers<[1], [0], [0], [1], [0, 0, 1, 1], [], []>} : vector<1x8xf32>, vector<8x128xf32>, vector<1x128xf32> -> vector<1x128xf32>
    %90 = vector.broadcast %87 : vector<1x128xf32> to vector<32x128xf32>
    %91 = arith.mulf %61, %90 : vector<32x128xf32>
    %92 = vector.broadcast %89 : vector<1x128xf32> to vector<32x128xf32>
    %93 = arith.addf %91, %92 : vector<32x128xf32>
    %cst_60 = arith.constant 0.000000e+00 : f32
    %94 = vector.broadcast %cst_60 : f32 to vector<32x128xf32>
    %95 = arith.maximumf %93, %94 : vector<32x128xf32>
    %c0_61 = arith.constant 0 : index
    %c0_62 = arith.constant 0 : index
    %96 = vector.load %arg9[%c0_61, %c0_62] : memref<128x128xf32, #tpu.memory_space<vmem>>, vector<128x128xf32>
    %cst_63 = arith.constant dense<0.000000e+00> : vector<32x128xf32>
    %97 = tpu.matmul %95, %96, %cst_63 {dimension_numbers = #tpu.dot_dimension_numbers<[1], [0], [0], [1], [0, 0, 1, 1], [], []>} : vector<32x128xf32>, vector<128x128xf32>, vector<32x128xf32> -> vector<32x128xf32>
    %98 = vector.broadcast %85 : vector<1x1xf32> to vector<32x128xf32>
    %99 = arith.addf %97, %98 : vector<32x128xf32>
    %c0_64 = arith.constant 0 : index
    %c0_65 = arith.constant 0 : index
    %100 = vector.load %arg2[%c0_64, %c0_65] : memref<32x128xf32, #tpu.memory_space<vmem>>, vector<32x128xf32>
    %101 = arith.mulf %99, %100 : vector<32x128xf32>
    %c0_66 = arith.constant 0 : index
    %c0_67 = arith.constant 0 : index
    %102 = vector.load %arg13[%c0_66, %c0_67] : memref<32x128xf32, #tpu.memory_space<vmem>>, vector<32x128xf32>
    tpu.vector_store %arg13[%c0_66, %c0_67], %101 {strides = array<i32>} : memref<32x128xf32, #tpu.memory_space<vmem>>, vector<32x128xf32>,
    return
  }
  func.func @transform_0(%arg0: i32) -> (i32, i32, i32) {
    %c0_i32 = arith.constant 0 : i32
    %c0_i32_0 = arith.constant 0 : i32
    %c0_i32_1 = arith.constant 0 : i32
    %c0_i32_2 = arith.constant 0 : i32
    return %c0_i32, %c0_i32_0, %c0_i32_1 : i32, i32, i32
  }
  func.func @transform_1(%arg0: i32) -> (i32, i32) {
    %c0_i32 = arith.constant 0 : i32
    %c0_i32_0 = arith.constant 0 : i32
    %c0_i32_1 = arith.constant 0 : i32
    return %c0_i32, %c0_i32_0 : i32, i32
  }
  func.func @transform_2(%arg0: i32) -> (i32, i32) {
    %c0_i32 = arith.constant 0 : i32
    %c0_i32_0 = arith.constant 0 : i32
    %c0_i32_1 = arith.constant 0 : i32
    return %c0_i32, %c0_i32_0 : i32, i32
  }
  func.func @transform_3(%arg0: i32) -> (i32, i32, i32) {
    %c0_i32 = arith.constant 0 : i32
    %c0_i32_0 = arith.constant 0 : i32
    %c0_i32_1 = arith.constant 0 : i32
    %c0_i32_2 = arith.constant 0 : i32
    return %c0_i32, %c0_i32_0, %c0_i32_1 : i32, i32, i32
  }
  func.func @transform_4(%arg0: i32) -> (i32, i32) {
    %c0_i32 = arith.constant 0 : i32
    %c0_i32_0 = arith.constant 0 : i32
    %c0_i32_1 = arith.constant 0 : i32
    return %c0_i32, %c0_i32_0 : i32, i32
  }
  func.func @transform_5(%arg0: i32) -> (i32, i32) {
    %c0_i32 = arith.constant 0 : i32
    %c0_i32_0 = arith.constant 0 : i32
    %c0_i32_1 = arith.constant 0 : i32
    return %c0_i32, %c0_i32_0 : i32, i32
  }
  func.func @transform_6(%arg0: i32) -> (i32, i32) {
    %c0_i32 = arith.constant 0 : i32
    %c0_i32_0 = arith.constant 0 : i32
    %c0_i32_1 = arith.constant 0 : i32
    return %c0_i32, %c0_i32_0 : i32, i32
  }
  func.func @transform_7(%arg0: i32) -> (i32, i32) {
    %c0_i32 = arith.constant 0 : i32
    %c0_i32_0 = arith.constant 0 : i32
    %c0_i32_1 = arith.constant 0 : i32
    return %c0_i32, %c0_i32_0 : i32, i32
  }
  func.func @transform_8(%arg0: i32) -> (i32, i32) {
    %c0_i32 = arith.constant 0 : i32
    %c0_i32_0 = arith.constant 0 : i32
    %c0_i32_1 = arith.constant 0 : i32
    return %c0_i32, %c0_i32_0 : i32, i32
  }
  func.func @transform_9(%arg0: i32) -> (i32, i32) {
    %c0_i32 = arith.constant 0 : i32
    %c0_i32_0 = arith.constant 0 : i32
    %c0_i32_1 = arith.constant 0 : i32
    return %c0_i32, %c0_i32_0 : i32, i32
  }
  func.func @transform_10(%arg0: i32) -> (i32, i32) {
    %c0_i32 = arith.constant 0 : i32
    %c0_i32_0 = arith.constant 0 : i32
    %c0_i32_1 = arith.constant 0 : i32
    return %c0_i32, %c0_i32_0 : i32, i32
  }
  func.func @transform_11(%arg0: i32) -> (i32, i32) {
    %c0_i32 = arith.constant 0 : i32
    %c0_i32_0 = arith.constant 0 : i32
    %c0_i32_1 = arith.constant 0 : i32
    return %c0_i32, %c0_i32_0 : i32, i32
  }
  func.func @transform_12(%arg0: i32) -> (i32, i32) {
    %c0_i32 = arith.constant 0 : i32
    %c0_i32_0 = arith.constant 0 : i32
    %c0_i32_1 = arith.constant 0 : i32
    return %c0_i32, %c0_i32_0 : i32, i32
  }
}

</mosaic_0001>

<bundles_post_ra>
// kernel: cross_attention_block.1
= control target key start
LH: loop header
LB: loop body
LE: loop exit
PB: predicated region body
PF: predicated region fallthrough
CT: control target
= control target key end

     0   :  { %vm55_vm0 = vcmask 1041408   ;;  %vm68_vm1 = vcmask 719872   ;;  %vm72_vm2 = vcmask 713728   ;;  %vm277_vm3 = vcmask 1043456   ;;  %s2190_s4 = inlined_call_operand.vmem [shape: f32[216,12], index: 4, kind: input, shape index: {}]   ;;  %s2191_s0 = inlined_call_operand.vmem [shape: f32[2,18,216], index: 0, kind: input, shape index: {}]   ;;  %s2192_s5 = inlined_call_operand.vmem [shape: f32[12,216], index: 5, kind: input, shape index: {}]   ;;  %s2193_s3 = inlined_call_operand.vmem [shape: bf16[3,216,128], index: 3, kind: input, shape index: {}]   ;;  %s2194_s10 = inlined_call_operand.vmem [shape: f32[2,12], index: 10, kind: input, shape index: {}]   ;;  %s2195_s2 = inlined_call_operand.vmem [shape: f32[18,216], index: 2, kind: input, shape index: {}]   ;;  %s2196_s9 = inlined_call_operand.vmem [shape: f32[1,128], index: 9, kind: input, shape index: {}]   ;;  %s2197_s6 = inlined_call_operand.vmem [shape: f32[128,8], index: 6, kind: input, shape index: {}]   ;;  %s2198_s7 = inlined_call_operand.vmem [shape: f32[8,128], index: 7, kind: input, shape index: {}]   ;;  %s2199_s8 = inlined_call_operand.vmem [shape: f32[128,128], index: 8, kind: input, shape index: {}]   ;;  %s2200_s11 = inlined_call_operand.vmem [shape: f32[3,8], index: 11, kind: input, shape index: {}]   ;;  %s2201_s1 = inlined_call_operand.vmem [shape: f32[32,128], index: 1, kind: input, shape index: {}]   ;;  %s2202_s12 = inlined_call_operand.vmem [shape: f32[32,128], index: 12, kind: output, shape index: {}]  }
   0x1   :  { %v1556_v0 = vld [vmem:[%s2190_s4 + $0x78] sm:$0xff]  ;;  %v1561_v1 = vld [vmem:[%s2190_s4 + $0x70] sm:$0xff]  ;;  %v1567_v2 = vld [vmem:[%s2190_s4 + $0x68] sm:$0xff]  ;;  %vm273_vm8 = vcmask 97280   ;;  %vm598_vm9 = vcmask 1046528   ;;  %vm791_vm10 = vcmask 1045504  }
   0x2   :  { %159 = vmatpush.msra.mxu0 %v1556_v0  ;;  %v1573_v3 = vld [vmem:[%s2190_s4 + $0x60] sm:$0xff]  ;;  %v155_v4 = vld [vmem:[%s2190_s4 + $0xd0] sm:$0xff]  ;;  %v154_v5 = vld [vmem:[%s2190_s4 + $0xc8] sm:$0xff]  ;;  %vm1084_vm14 = vcmask 64512  }
   0x3   :  { %v1585_v6 = vld [vmem:[%s2190_s4 + $0x58] sm:$0xff]  ;;  %v1590_v7 = vld [vmem:[%s2190_s4 + $0x50] sm:$0xff]  ;;  %184 = vmatpush.msra.mxu1 %v155_v4  ;;  %227 = vmatpush.msra.mxu3 %v155_v4  ;;  %v1595_v8 = vld [vmem:[%s2191_s0] sm:$0xff] }
   0x4   :  { %160 = vmatpush.msra.mxu0 %v1561_v1  ;;  %v153_v9 = vld [vmem:[%s2190_s4 + $0xc0] sm:$0xff]  ;;  %v1604_v10 = vld [vmem:[%s2191_s0 + $0x10] sm:$0xff]  ;;  %v152_v12 = vld [vmem:[%s2190_s4 + $0xb8] sm:$0xff]  ;;  %v87_v26 = vmul.f32 %v1595_v8, %v1595_v8 }
   0x5   :  { %v1609_v11 = vld [vmem:[%s2191_s0 + $0x20] sm:$0x3]  ;;  %185 = vmatpush.msra.mxu1 %v154_v5  ;;  %228 = vmatpush.msra.mxu3 %v154_v5  ;;  %v1617_v13 = vld [vmem:[%s2191_s0 + $0x30] sm:$0xff]  ;;  %v54_v15 = vadd.f32 %v1604_v10, %v1595_v8  ;;  %v1632_v17 = vld [vmem:[%s2191_s0 + $0x8] sm:$0xff]  ;;  %v89_v53 = vmul.f32 %v1604_v10, %v1604_v10 }
   0x6   :  { %161 = vmatpush.msra.mxu0 %v1567_v2  ;;  %v1622_v14 = vld [vmem:[%s2191_s0 + $0x50] sm:$0x3]  ;;  %v56_v16 = vsel %vm55_vm0, %v1609_v11, 0.0  ;;  %v1637_v18 = vld [vmem:[%s2191_s0 + $0x18] sm:$0xff]  ;;  %v1642_v19 = vld [vmem:[%s2191_s0 + $0x28] sm:$0x3]  ;;  %v91_v30 = vmul.f32 %v1609_v11, %v1609_v11  ;;  %v88_v36 = vmul.f32 %v1632_v17, %v1632_v17 }
   0x7   :  { %v1647_v20 = vld [vmem:[%s2190_s4 + $0x48] sm:$0xff]  ;;  %186 = vmatpush.msra.mxu1 %v153_v9  ;;  %229 = vmatpush.msra.mxu3 %v153_v9  ;;  %v57_v21 = vadd.f32 %v56_v16, %v54_v15  ;;  %v1652_v22 = vld [vmem:[%s2191_s0 + $0x38] sm:$0xff]  ;;  %v69_v24 = vsel %vm68_vm1, %v1632_v17, 0.0  ;;  %v70_v25 = vsel %vm68_vm1, %v1637_v18, 0.0  ;;  %v151_v27 = vld [vmem:[%s2190_s4 + $0xb0] sm:$0xff]  ;;  %v60_v29 = vsel %vm55_vm0, %v1622_v14, 0.0 }
   0x8   :  { %162 = vmatpush.msra.mxu0 %v1573_v3  ;;  %v1657_v23 = vld [vmem:[%s2191_s0 + $0x48] sm:$0xff]  ;;  %v1672_v28 = vld [vmem:[%s2191_s0 + $0x40] sm:$0xff]  ;;  %v71_v31 = vadd.f32 %v70_v25, %v69_v24  ;;  %v73_v32 = vsel %vm72_vm2, %v1642_v19, 0.0  ;;  %v75_v35 = vsel %vm68_vm1, %v1652_v22, 0.0  ;;  %v90_v37 = vmul.f32 %v1637_v18, %v1637_v18  ;;  %v1699_v39 = vld [vmem:[%s2191_s0 + $0x58] sm:$0x3] }
   0x9   :  { %v1683_v33 = vld [vmem:[%s2190_s4 + $0x40] sm:$0xff]  ;;  %187 = vmatpush.msra.mxu1 %v152_v12  ;;  %230 = vmatpush.msra.mxu3 %v152_v12  ;;  %v58_v34 = vadd.f32 %v57_v21, %v1617_v13  ;;  %v150_v38 = vld [vmem:[%s2190_s4 + $0xa8] sm:$0xff]  ;;  %v77_v41 = vsel %vm68_vm1, %v1657_v23, 0.0  ;;  %v92_v42 = vmul.f32 %v1642_v19, %v1642_v19  ;;  %v94_v43 = vmul.f32 %v1652_v22, %v1652_v22  ;;  %v1710_v44 = vld [vmem:[%s2190_s4 + $0x38] sm:$0xff] }
   0xa   :  { %163 = vmatpush.msra.mxu0 %v1585_v6  ;;  %v74_v40 = vadd.f32 %v73_v32, %v71_v31  ;;  %v96_v46 = vmul.f32 %v1657_v23, %v1657_v23  ;;  %v112_v47 = vsel %vm68_vm1, %v88_v36, 0.0  ;;  %v113_v48 = vsel %vm68_vm1, %v90_v37, 0.0  ;;  %v149_v49 = vld [vmem:[%s2190_s4 + $0xa0] sm:$0xff]  ;;  %v1727_v54 = vld [vmem:[%s2190_s4 + $0x30] sm:$0xff]  ;;  %v148_v59 = vld [vmem:[%s2190_s4 + $0x98] sm:$0xff] }
   0xb   :  { %188 = vmatpush.msra.mxu1 %v151_v27  ;;  %231 = vmatpush.msra.mxu3 %v151_v27  ;;  %v59_v45 = vadd.f32 %v58_v34, %v1672_v28  ;;  %v114_v51 = vadd.f32 %v113_v48, %v112_v47  ;;  %v115_v52 = vsel %vm72_vm2, %v92_v42, 0.0  ;;  %v79_v56 = vsel %vm72_vm2, %v1699_v39, 0.0  ;;  %v1741_v62 = vld [vmem:[%s2190_s4 + $0x28] sm:$0xff]  ;;  %v147_v5 = vld [vmem:[%s2190_s4 + $0x90] sm:$0xff]  ;;  %v1751_v16 = vld [vmem:[%s2190_s4 + $0x20] sm:$0xff] }
   0xc   :  { %164 = vmatpush.msra.mxu0 %v1590_v7  ;;  %v76_v50 = vadd.f32 %v75_v35, %v74_v40  ;;  %v98_v57 = vmul.f32 %v1699_v39, %v1699_v39  ;;  %v117_v58 = vsel %vm68_vm1, %v94_v43, 0.0  ;;  %v119_v4 = vsel %vm68_vm1, %v96_v46, 0.0  ;;  %v146_v27 = vld [vmem:[%s2190_s4 + $0x88] sm:$0xff]  ;;  %v132_v31 = vld [vmem:[%s2190_s4 + $0x18] sm:$0xff] }
   0xd   :  { %189 = vmatpush.msra.mxu1 %v150_v38  ;;  %232 = vmatpush.msra.mxu3 %v150_v38  ;;  %v61_v55 = vadd.f32 %v60_v29, %v59_v45  ;;  %v116_v61 = vadd.f32 %v115_v52, %v114_v51  ;;  %v99_v15 = vadd.f32 %v89_v53, %v87_v26  ;;  %v100_v24 = vsel %vm55_vm0, %v91_v30, 0.0  ;;  %v145_v30 = vld [vmem:[%s2190_s4 + $0x80] sm:$0xff]  ;;  %v131_v38 = vld [vmem:[%s2190_s4 + $0x10] sm:$0xff]  ;;  %v130_v43 = vld [vmem:[%s2190_s4 + $0x8] sm:$0xff] }
   0xe   :  { %165 = vmatpush.msra.mxu0 %v1647_v20  ;;  %v78_v60 = vadd.f32 %v77_v41, %v76_v50  ;;  %v121_v25 = vsel %vm72_vm2, %v98_v57, 0.0  ;;  %v93_v36 = vmul.f32 %v1617_v13, %v1617_v13  ;;  %v95_v48 = vmul.f32 %v1672_v28, %v1672_v28  ;;  %v129_v50 = vld [vmem:[%s2190_s4] sm:$0xff] }
   0xf   :  { %190 = vmatpush.msra.mxu1 %v149_v49  ;;  %233 = vmatpush.msra.mxu3 %v149_v49  ;;  %v62_v63 = vrot.slane %v61_v55, 4  ;;  %v118_v12 = vadd.f32 %v117_v58, %v116_v61  ;;  %v101_v37 = vadd.f32 %v100_v24, %v99_v15  ;;  %v97_v51 = vmul.f32 %v1622_v14, %v1622_v14  ;;  %v269_v15 = vld [vmem:[%s2192_s5] sm:$0xff] }
  0x10   :  { %166 = vmatpush.msra.mxu0 %v1683_v33  ;;  %v80_v9 = vadd.f32 %v79_v56, %v78_v60 }
  0x11   :  { %191 = vmatpush.msra.mxu1 %v148_v59  ;;  %234 = vmatpush.msra.mxu3 %v148_v59  ;;  %v63_v21 = vadd.f32 %v62_v63, %v61_v55  ;;  %v120_v26 = vadd.f32 %v119_v4, %v118_v12  ;;  %v102_v49 = vadd.f32 %v101_v37, %v93_v36  ;;  %v104_v59 = vsel %vm55_vm0, %v97_v51, 0.0  ;;  %v271_v12 = vld [vmem:[%s2192_s5 + $0x10] sm:$0xf]  ;;  %v1457_v51 = vld [vmem:[%s2193_s3 + $0x9c] sm:$0xff] }
  0x12   :  { %167 = vmatpush.msra.mxu0 %v1710_v44  ;;  %v81_v29 = vrot.slane %v80_v9, 4  ;;  %v1444_v37 = vld [vmem:[%s2193_s3 + $0x30] sm:$0xff] }
  0x13   :  { %192 = vmatpush.msra.mxu1 %v147_v5  ;;  %235 = vmatpush.msra.mxu3 %v147_v5  ;;  %v64_v32 = vrot.slane %v63_v21, 2  ;;  %v122_v35 = vadd.f32 %v121_v25, %v120_v26  ;;  %v103_v58 = vadd.f32 %v102_v49, %v95_v48  ;;  %v1458_v49 = vld [vmem:[%s2193_s3 + $0xa4] sm:$0xff] }
  0x14   :  { %168 = vmatpush.msra.mxu0 %v1727_v54  ;;  %v82_v34 = vadd.f32 %v81_v29, %v80_v9 }
  0x15   :  { %193 = vmatpush.msra.mxu1 %v146_v27  ;;  %236 = vmatpush.msra.mxu3 %v146_v27  ;;  %v65_v40 = vadd.f32 %v64_v32, %v63_v21  ;;  %v123_v42 = vrot.slane %v122_v35, 4  ;;  %v105_v63 = vadd.f32 %v104_v59, %v103_v58  ;;  %v1442_v59 = vld [vmem:[%s2193_s3 + $0x20] sm:$0xff] }
  0x16   :  { %169 = vmatpush.msra.mxu0 %v1741_v62  ;;  %v83_v41 = vrot.slane %v82_v34, 2 }
  0x17   :  { %194 = vmatpush.msra.mxu1 %v145_v30  ;;  %v66_v45 = vrot.slane %v65_v40, 1  ;;  %237 = vmatpush.msra.mxu3 %v145_v30  ;;  %v124_v47 = vadd.f32 %v123_v42, %v122_v35  ;;  %v106_v4 = vrot.slane %v105_v63, 4  ;;  %v1445_v35 = vld [vmem:[%s2193_s3 + $0x38] sm:$0xff] }
  0x18   :  { %170 = vmatpush.msra.mxu0 %v1751_v16  ;;  %v84_v46 = vadd.f32 %v83_v41, %v82_v34 }
  0x19   :  { %v67_v52 = vadd.f32 %v66_v45, %v65_v40  ;;  %v125_v55 = vrot.slane %v124_v47, 2  ;;  %1212 = vmatpush.msk.msrb.mxu1 %vm277_vm3, %v271_v12 }
  0x1a   :  { %171 = vmatpush.msra.mxu0 %v132_v31  ;;  %v85_v53 = vrot.slane %v84_v46, 1 }
  0x1b   :  { %v126_v57 = vadd.f32 %v125_v55, %v124_v47  ;;  %299 = vmatpush.msrb.mxu1 %v269_v15  ;;  %v1456_v55 = vld [vmem:[%s2193_s3 + $0x94] sm:$0xff] }
  0x1c   :  { %172 = vmatpush.msra.mxu0 %v131_v38  ;;  %v86_v56 = vadd.f32 %v85_v53, %v84_v46  ;;  %v253_v46 = vld [vmem:[%s2194_s10] sm:$0x1]  ;;  %v266_v53 = vld [vmem:[%s2194_s10 + $0x1] sm:$0x1] }
  0x1d   :  { %v127_v60 = vrot.slane %v126_v57, 1 }
  0x1e   :  { %173 = vmatpush.msra.mxu0 %v130_v43  ;;  %1210 = vmatmul.msk.f32.vlgmr.msra.gmra.mxu1 %vm68_vm1, %v86_v56 }
  0x1f   :  { %v128_v61 = vadd.f32 %v127_v60, %v126_v57  ;;  %1216 = vmatpush.msk.msra.mxu1 %vm277_vm3, %v271_v12  ;;  %v450_v57 = vld [vmem:[%s2193_s3 + $0x68] sm:$0xf]  ;;  %v1452_v12 = vld [vmem:[%s2193_s3 + $0x74] sm:$0xff] }
  0x20   :  { %174 = vmatpush.msra.mxu0 %v129_v50  ;;  %v504_v58 = vunpack.c.l.b16 %v450_v57 }
  0x21   :  { %175 = vmatmul.f32.vlgmr.msra.gmra.mxu0 %v67_v52  ;;  %1211 = vmatmul.msk.f32.vlgmr.msra.gmra.mxu3 %vm68_vm1, %v128_v61  ;;  %v1300_v61 = vld [vmem:[%s2193_s3 + $0xd4] sm:$0xf] }
  0x22   :  { %202 = vmatpush.msrb.mxu0 %v1556_v0  ;;  %v107_v0 = vadd.f32 %v106_v4, %v105_v63  ;;  %342 = vmatpush.msra.mxu1 %v269_v15  ;;  %v518_v60 = vpack.c.b16 %v504_v58, %v504_v58  ;;  %v712_v63 = vunpack.c.l.b16 %v1300_v61  ;;  %v1438_v15 = vld [vmem:[%s2193_s3] sm:$0xff]  ;;  %v1467_v58 = vld [vmem:[%s2193_s3 + $0xf0] sm:$0xff] }
  0x24   :  { %203 = vmatpush.msrb.mxu0 %v1561_v1  ;;  %v108_v5 = vrot.slane %v107_v0, 2  ;;  %v539_v4 = vsel %vm277_vm3, %v518_v60, 0 }
  0x25   :  { %562 = vmatpush.bf16.msra.mxu2 %v539_v4  ;;  %v368_v4 = vld [vmem:[%s2195_s2 + $0x8] sm:$0xff] }
  0x26   :  { %204 = vmatpush.msrb.mxu0 %v1567_v2  ;;  %v109_v1 = vadd.f32 %v108_v5, %v107_v0  ;;  %v1455_v0 = vld [vmem:[%s2193_s3 + $0x8c] sm:$0xff]  ;;  %v1441_v5 = vld [vmem:[%s2193_s3 + $0x18] sm:$0xff] }
  0x28   :  { %205 = vmatpush.msrb.mxu0 %v1573_v3  ;;  %v110_v2 = vrot.slane %v109_v1, 1 }
  0x2a   :  { %206 = vmatpush.msrb.mxu0 %v1585_v6  ;;  %v111_v3 = vadd.f32 %v110_v2, %v109_v1  ;;  %v1487_v6 = vmov 512.0   ;;  %v726_v1 = vpack.c.b16 %v712_v63, %v712_v63 }
  0x2b   :  { %1481 = vrcp.f32 %v1487_v6  ;;  %v1454_v6 = vld [vmem:[%s2193_s3 + $0x84] sm:$0xff] }
  0x2c   :  { %207 = vmatpush.msrb.mxu0 %v1590_v7  ;;  %v747_v2 = vsel %vm277_vm3, %v726_v1, 0 }
  0x2e   :  { %208 = vmatpush.msrb.mxu0 %v1647_v20 }
  0x30   :  { %209 = vmatpush.msrb.mxu0 %v1683_v33 }
  0x31   :  { %v1482_v7 = vpop.eup %1481 }
  0x32   :  { %210 = vmatpush.msrb.mxu0 %v1710_v44  ;;  %v243_v20 = vmul.f32 512.0, %v1482_v7  ;;  %vm247_vm4 = vweird.f32 %v1482_v7 }
  0x34   :  { %211 = vmatpush.msrb.mxu0 %v1727_v54  ;;  %v244_v33 = vsub.f32 1.0, %v243_v20  ;;  %v272_v54 = vld [vmem:[%s2192_s5 + $0x18] sm:$0xf]  ;;  %v1463_v20 = vld [vmem:[%s2193_s3 + $0xcc] sm:$0xff] }
  0x35   :  { %1214 = vmatpush.msk.msrb.mxu3 %vm277_vm3, %v272_v54 }
  0x36   :  { %212 = vmatpush.msrb.mxu0 %v1741_v62  ;;  %v245_v44 = vmul.f32 %v1482_v7, %v244_v33  ;;  %v270_v62 = vld [vmem:[%s2192_s5 + $0x8] sm:$0xff]  ;;  %v1449_v33 = vld [vmem:[%s2193_s3 + $0x58] sm:$0xff] }
  0x37   :  { %319 = vmatpush.msrb.mxu3 %v270_v62 }
  0x38   :  { %213 = vmatpush.msrb.mxu0 %v1751_v16  ;;  %v246_v21 = vadd.f32 %v1482_v7, %v245_v44  ;;  %v1453_v44 = vld [vmem:[%s2193_s3 + $0x7c] sm:$0xff] }
  0x39   :  { %1218 = vmatpush.msk.msra.mxu3 %vm277_vm3, %v272_v54  ;;  %v1462_v54 = vld [vmem:[%s2193_s3 + $0xc4] sm:$0xff] }
  0x3a   :  { %214 = vmatpush.msrb.mxu0 %v132_v31  ;;  %v1812_v25 = vsel %vm247_vm4, %v1482_v7, %v246_v21  ;;  %v1440_v7 = vld [vmem:[%s2193_s3 + $0x10] sm:$0xff]  ;;  %v1447_v21 = vld [vmem:[%s2193_s3 + $0x48] sm:$0xff] }
  0x3b   :  { %362 = vmatpush.msra.mxu3 %v270_v62  ;;  %v1448_v62 = vld [vmem:[%s2193_s3 + $0x50] sm:$0xff] }
  0x3c   :  { %215 = vmatpush.msrb.mxu0 %v131_v38  ;;  %v1443_v38 = vld [vmem:[%s2193_s3 + $0x28] sm:$0xff] }
  0x3e   :  { %216 = vmatpush.msrb.mxu0 %v130_v43 }
  0x40   :  { %217 = vmatpush.msrb.mxu0 %v129_v50 }
  0x41   :  { %218 = vmatmul.f32.vlgmr.msrb.gmra.mxu0 %v111_v3  ;;  %v1450_v3 = vld [vmem:[%s2193_s3 + $0x60] sm:$0xff] }
  0x42   :  { %541 = vmatpush.bf16.msra.mxu0 %v1445_v35  ;;  %563 = vmatpush.bf16.msra.mxu2 %v1450_v3  ;;  %v370_v3 = vld [vmem:[%s2195_s2 + $0x18] sm:$0xff] }
  0x46   :  { %542 = vmatpush.bf16.msra.mxu0 %v1444_v37  ;;  %564 = vmatpush.bf16.msra.mxu2 %v1449_v33  ;;  %v1469_v37 = vld [vmem:[%s2193_s3 + $0x100] sm:$0xff] }
  0x4a   :  { %543 = vmatpush.bf16.msra.mxu0 %v1443_v38  ;;  %565 = vmatpush.bf16.msra.mxu2 %v1448_v62 }
  0x4e   :  { %544 = vmatpush.bf16.msra.mxu0 %v1442_v59  ;;  %566 = vmatpush.bf16.msra.mxu2 %v1447_v21 }
  0x52   :  { %545 = vmatpush.bf16.msra.mxu0 %v1441_v5 }
  0x56   :  { %546 = vmatpush.bf16.msra.mxu0 %v1440_v7 }
  0x9b   :  { %v196_v16 = vpop.f32.mrf.mxu1 }
  0x9e   :  { %v176_v9 = vpop.f32.mrf.mxu0 }
  0x9f   :  { %v197_v24 = vadd.f32 %v196_v16, %v176_v9  ;;  %v1439_v9 = vld [vmem:[%s2193_s3 + $0x8] sm:$0xff]  ;;  %v1461_v16 = vld [vmem:[%s2193_s3 + $0xbc] sm:$0xff] }
  0xa0   :  { %547 = vmatpush.bf16.msra.mxu0 %v1439_v9 }
  0xa1   :  { %v249_v29 = vmul.f32 %v1812_v25, %v197_v24  ;;  %v1451_v24 = vld [vmem:[%s2193_s3 + $0x6c] sm:$0xff] }
  0xa3   :  { %v251_v32 = vmul.f32 %v249_v29, %v249_v29 }
  0xa4   :  { %v239_v27 = vpop.f32.mrf.mxu3  ;;  %548 = vmatpush.bf16.msra.mxu0 %v1438_v15 }
  0xbe   :  { %v219_v26 = vpop.f32.mrf.mxu0 }
  0xbf   :  { %v240_v31 = vadd.f32 %v239_v27, %v219_v26  ;;  %v1460_v27 = vld [vmem:[%s2193_s3 + $0xb4] sm:$0xff]  ;;  %v1459_v26 = vld [vmem:[%s2193_s3 + $0xac] sm:$0xff] }
  0xc1   :  { %v250_v30 = vmul.f32 %v1812_v25, %v240_v31  ;;  %v1471_v31 = vld [vmem:[%s2193_s3 + $0x110] sm:$0xff] }
  0xc3   :  { %v252_v34 = vsub.f32 %v250_v30, %v251_v32  ;;  %v1381_v32 = vld [vmem:[%s2193_s3 + $0x140] sm:$0xf]  ;;  %v1470_v30 = vld [vmem:[%s2193_s3 + $0x108] sm:$0xff] }
  0xc5   :  { %v254_v36 = vadd.f32 1e-05, %v252_v34  ;;  %v905_v34 = vunpack.c.l.b16 %v1381_v32 }
  0xc7   :  { %1483 = vrsqrt.f32 %v254_v36  ;;  %vm261_vm6 = vweird.f32 %v254_v36 }
  0xcd   :  { %v1484_v40 = vpop.eup %1483 }
  0xce   :  { %v256_v41 = vmul.f32 %v1484_v40, %v254_v36  ;;  %vm262_vm5 = vweird.f32 %v1484_v40  ;;  %v919_v36 = vpack.c.b16 %v905_v34, %v905_v34 }
  0xcf   :  { %vm263_vm7 = vmor %vm261_vm6, %vm262_vm5 }
  0xd0   :  { %v257_v42 = vmul.f32 %v1484_v40, %v256_v41  ;;  %v940_v38 = vsel %vm277_vm3, %v919_v36, 0  ;;  %v1464_v36 = vld [vmem:[%s2193_s3 + $0xd8] sm:$0xff] }
  0xd2   :  { %v258_v43 = vmul.f32 0.5, %v257_v42 }
  0xd4   :  { %v259_v45 = vsub.f32 1.5, %v258_v43  ;;  %v1468_v43 = vld [vmem:[%s2193_s3 + $0xf8] sm:$0xff] }
  0xd6   :  { %v260_v47 = vmul.f32 %v1484_v40, %v259_v45  ;;  %v1475_v45 = vld [vmem:[%s2193_s3 + $0x130] sm:$0xff] }
  0xd8   :  { %v264_v48 = vsel %vm263_vm7, %v1484_v40, %v260_v47  ;;  %v1476_v40 = vld [vmem:[%s2193_s3 + $0x138] sm:$0xff]  ;;  %v367_v47 = vld [vmem:[%s2195_s2] sm:$0xff] }
  0xd9   :  { %v265_v50 = vmul.f32 %v264_v48, %v253_v46  ;;  %v369_v48 = vld [vmem:[%s2195_s2 + $0x10] sm:$0xff] }
  0xdb   :  { %1213 = vmatmul.msk.f32.vlgmr.msrb.gmra.mxu1 %vm273_vm8, %v265_v50  ;;  %1215 = vmatmul.msk.f32.vlgmr.msrb.gmra.mxu3 %vm273_vm8, %v265_v50  ;;  %v267_v52 = vmul.f32 %v265_v50, %v249_v29  ;;  %v1446_v29 = vld [vmem:[%s2193_s3 + $0x40] sm:$0xff] }
  0xdc   :  { %749 = vmatpush.bf16.msrb.mxu1 %v1458_v49  ;;  %770 = vmatpush.bf16.msrb.mxu3 %v747_v2  ;;  %v371_v49 = vld [vmem:[%s2195_s2 + $0x20] sm:$0x3] }
  0xdd   :  { %v268_v56 = vsub.f32 %v266_v53, %v267_v52  ;;  %567 = vmatpush.bf16.msra.mxu2 %v1446_v29  ;;  %v1472_v29 = vld [vmem:[%s2193_s3 + $0x118] sm:$0xff] }
  0xe0   :  { %750 = vmatpush.bf16.msrb.mxu1 %v1457_v51  ;;  %771 = vmatpush.bf16.msrb.mxu3 %v1463_v20 }
  0xe1   :  { %942 = vmatpush.bf16.msrb.mxu2 %v1471_v31 }
  0xe3   :  { %1217 = vmatmul.msk.f32.vlgmr.msra.gmra.mxu1 %vm273_vm8, %v268_v56  ;;  %1219 = vmatmul.msk.f32.vlgmr.msra.gmra.mxu3 %vm273_vm8, %v268_v56 }
  0xe4   :  { %751 = vmatpush.bf16.msrb.mxu1 %v1456_v55  ;;  %772 = vmatpush.bf16.msrb.mxu3 %v1462_v54 }
  0xe5   :  { %943 = vmatpush.bf16.msrb.mxu2 %v1470_v30 }
  0xe8   :  { %752 = vmatpush.bf16.msrb.mxu1 %v1455_v0  ;;  %773 = vmatpush.bf16.msrb.mxu3 %v1461_v16  ;;  %v372_v0 = vld [vmem:[%s2195_s2 + $0x28] sm:$0x3] }
  0xe9   :  { %944 = vmatpush.bf16.msrb.mxu2 %v1469_v37 }
  0xec   :  { %753 = vmatpush.bf16.msrb.mxu1 %v1454_v6  ;;  %774 = vmatpush.bf16.msrb.mxu3 %v1460_v27  ;;  %v1473_v6 = vld [vmem:[%s2193_s3 + $0x120] sm:$0xff] }
  0xed   :  { %945 = vmatpush.bf16.msrb.mxu2 %v1468_v43 }
  0xf0   :  { %754 = vmatpush.bf16.msrb.mxu1 %v1453_v44  ;;  %775 = vmatpush.bf16.msrb.mxu3 %v1459_v26 }
  0xf1   :  { %946 = vmatpush.bf16.msrb.mxu2 %v1467_v58 }
  0xf4   :  { %755 = vmatpush.bf16.msrb.mxu1 %v1452_v12  ;;  %963 = vmatpush.bf16.msra.mxu3 %v940_v38 }
  0xf8   :  { %756 = vmatpush.bf16.msrb.mxu1 %v1451_v24  ;;  %964 = vmatpush.bf16.msra.mxu3 %v1476_v40 }
  0xfc   :  { %965 = vmatpush.bf16.msra.mxu3 %v1475_v45 }
 0x158   :  { %v301_v35 = vpop.f32.mrf.mxu1 }
 0x159   :  { %v381_v41 = vperm.slane %v301_v35, 0 }
 0x15b   :  { %v383_v51 = vmul.f32 %v381_v41, %v1595_v8  ;;  %v385_v52 = vmul.f32 %v381_v41, %v1604_v10  ;;  %v387_v57 = vmul.f32 %v381_v41, %v1609_v11  ;;  %v1474_v8 = vld [vmem:[%s2193_s3 + $0x128] sm:$0xff]  ;;  %v393_v7 = vmul.f32 %v381_v41, %v1622_v14  ;;  %v1465_v14 = vld [vmem:[%s2193_s3 + $0xe0] sm:$0xff] }
 0x15c   :  { %v1466_v10 = vld [vmem:[%s2193_s3 + $0xe8] sm:$0xff]  ;;  %966 = vmatpush.bf16.msra.mxu3 %v1474_v8  ;;  %v389_v27 = vmul.f32 %v381_v41, %v1617_v13  ;;  %v391_v30 = vmul.f32 %v381_v41, %v1672_v28 }
 0x15d   :  { %947 = vmatpush.bf16.msrb.mxu2 %v1466_v10 }
 0x15e   :  { %v321_v42 = vpop.f32.mrf.mxu3 }
 0x15f   :  { %v382_v59 = vperm.slane %v321_v42, 0 }
 0x160   :  { %v344_v46 = vpop.f32.mrf.mxu1  ;;  %967 = vmatpush.bf16.msra.mxu3 %v1473_v6 }
 0x161   :  { %v373_v50 = vperm.slane %v344_v46, 0  ;;  %v384_v33 = vmul.f32 %v382_v59, %v1632_v17  ;;  %v386_v44 = vmul.f32 %v382_v59, %v1637_v18  ;;  %v388_v18 = vmul.f32 %v382_v59, %v1642_v19  ;;  %948 = vmatpush.bf16.msrb.mxu2 %v1465_v14 }
 0x162   :  { %v390_v42 = vmul.f32 %v382_v59, %v1652_v22  ;;  %v392_v46 = vmul.f32 %v382_v59, %v1657_v23 }
 0x163   :  { %v375_v53 = vmul.f32 %v373_v50, %v367_v47  ;;  %v377_v55 = vmul.f32 %v373_v50, %v369_v48  ;;  %v379_v56 = vmul.f32 %v373_v50, %v371_v49  ;;  %v394_v47 = vmul.f32 %v382_v59, %v1699_v39 }
 0x164   :  { %968 = vmatpush.bf16.msra.mxu3 %v1472_v29 }
 0x165   :  { %v395_v60 = vadd.f32 %v383_v51, %v375_v53  ;;  %v397_v61 = vadd.f32 %v385_v52, %v377_v55  ;;  %v1945_v63 = vadd.f32 %v387_v57, %v379_v56  ;;  %v1990_v34 = vadd.f32 %v393_v7, %v379_v56  ;;  %949 = vmatpush.bf16.msrb.mxu2 %v1464_v36 }
 0x166   :  { %v364_v11 = vpop.f32.mrf.mxu3  ;;  %v401_v35 = vadd.f32 %v389_v27, %v375_v53  ;;  %v403_v40 = vadd.f32 %v391_v30, %v377_v55 }
 0x167   :  { %v1959_v5 = vmax.f32 %v395_v60, 0.0  ;;  %v1961_v1 = vmax.f32 %v397_v61, 0.0  ;;  %v411_v2 = vmax.f32 %v1945_v63, 0.0  ;;  %v374_v20 = vperm.slane %v364_v11, 0 }
 0x168   :  { %v417_v41 = vmax.f32 %v1990_v34, 0.0  ;;  %v413_v51 = vmax.f32 %v401_v35, 0.0  ;;  %v415_v52 = vmax.f32 %v403_v40, 0.0  ;;  %v1021_v40 = vld [vmem:[%s2197_s6 + $0x78] sm:$0xff] }
 0x169   :  { %v599_v9 = vrot.slane %v1959_v5, 1  ;;  %v600_v54 = vrot.slane %v1961_v1, 1  ;;  %v605_v62 = vrot.slane %v411_v2, 1  ;;  %v420_v12 = vpack.c.bf16 %v1961_v1, %v1959_v5  ;;  %1022 = vmatpush.msrb.mxu0 %v1021_v40  ;;  %1042 = vmatpush.msra.mxu1 %v1021_v40 }
 0x16a   :  { %v376_v15 = vmul.f32 %v374_v20, %v368_v4  ;;  %v378_v16 = vmul.f32 %v374_v20, %v370_v3  ;;  %v380_v17 = vmul.f32 %v374_v20, %v372_v0  ;;  %v609_v57 = vrot.slane %v413_v51, 1 }
 0x16b   :  { %549 = vmatmul.bf16.vlgmr.msra.gmra.mxu0 %v420_v12  ;;  %v601_v21 = vsel %vm598_vm9, %v599_v9, %v600_v54  ;;  %v606_v24 = vsel %vm598_vm9, %v600_v54, %v605_v62  ;;  %v610_v23 = vrot.slane %v415_v52, 1  ;;  %v615_v58 = vrot.slane %v417_v41, 1 }
 0x16c   :  { %v396_v26 = vadd.f32 %v384_v33, %v376_v15  ;;  %v398_v31 = vadd.f32 %v386_v44, %v378_v16  ;;  %v400_v32 = vadd.f32 %v388_v18, %v380_v17  ;;  %v627_v19 = vpack.c.bf16 %v606_v24, %v601_v21 }
 0x16d   :  { %v402_v53 = vadd.f32 %v390_v42, %v376_v15  ;;  %v404_v55 = vadd.f32 %v392_v46, %v378_v16  ;;  %v406_v56 = vadd.f32 %v394_v47, %v380_v17  ;;  %v422_v61 = vpack.c.bf16 %v415_v52, %v413_v51  ;;  %v1020_v42 = vld [vmem:[%s2197_s6 + $0x70] sm:$0xff]  ;;  %v1018_v47 = vld [vmem:[%s2197_s6 + $0x60] sm:$0xff] }
 0x16e   :  { %v408_v13 = vmax.f32 %v396_v26, 0.0  ;;  %v410_v37 = vmax.f32 %v398_v31, 0.0  ;;  %v412_v38 = vmax.f32 %v400_v32, 0.0  ;;  %757 = vmatmul.bf16.vlgmr.msrb.gmra.mxu1 %v627_v19  ;;  %v611_v8 = vsel %vm598_vm9, %v609_v57, %v610_v23  ;;  %1023 = vmatpush.msrb.mxu0 %v1020_v42  ;;  %v1013_v57 = vld [vmem:[%s2197_s6 + $0x38] sm:$0xff] }
 0x16f   :  { %v414_v39 = vmax.f32 %v402_v53, 0.0  ;;  %v416_v59 = vmax.f32 %v404_v55, 0.0  ;;  %v418_v60 = vmax.f32 %v406_v56, 0.0  ;;  %v616_v10 = vsel %vm598_vm9, %v610_v23, %v615_v58  ;;  %1043 = vmatpush.msra.mxu1 %v1020_v42  ;;  %v1014_v56 = vld [vmem:[%s2197_s6 + $0x40] sm:$0xff]  ;;  %v1012_v58 = vld [vmem:[%s2197_s6 + $0x30] sm:$0xff] }
 0x170   :  { %v602_v43 = vrot.slane %v408_v13, 1  ;;  %v603_v45 = vrot.slane %v410_v37, 1  ;;  %v607_v28 = vrot.slane %v412_v38, 1  ;;  %v421_v48 = vpack.c.bf16 %v410_v37, %v408_v13 }
 0x171   :  { %v612_v11 = vrot.slane %v414_v39, 1  ;;  %v613_v4 = vrot.slane %v416_v59, 1  ;;  %v617_v0 = vrot.slane %v418_v60, 1  ;;  %v629_v3 = vpack.c.bf16 %v616_v10, %v611_v8  ;;  %v1010_v10 = vld [vmem:[%s2197_s6 + $0x20] sm:$0xff] }
 0x172   :  { %v604_v49 = vsel %vm598_vm9, %v602_v43, %v603_v45  ;;  %v608_v50 = vsel %vm598_vm9, %v603_v45, %v607_v28  ;;  %1272 = vmatmul.msk.bf16.vlgmr.msra.gmra.mxu2 %vm68_vm1, %v421_v48  ;;  %v423_v20 = vpack.c.bf16 %v416_v59, %v414_v39  ;;  %v792_v44 = vrot.slane %v1959_v5, 2  ;;  %v1019_v28 = vld [vmem:[%s2197_s6 + $0x68] sm:$0xff]  ;;  %v1017_v48 = vld [vmem:[%s2197_s6 + $0x58] sm:$0xff] }
 0x173   :  { %v628_v22 = vpack.c.bf16 %v608_v50, %v604_v49  ;;  %v614_v6 = vsel %vm598_vm9, %v612_v11, %v613_v4  ;;  %v618_v7 = vsel %vm598_vm9, %v613_v4, %v617_v0  ;;  %v793_v9 = vrot.slane %v1961_v1, 2  ;;  %1024 = vmatpush.msrb.mxu0 %v1019_v28  ;;  %1044 = vmatpush.msra.mxu1 %v1019_v28  ;;  %v1016_v50 = vld [vmem:[%s2197_s6 + $0x50] sm:$0xff]  ;;  %v1480_v4 = vld [vmem:[%s2196_s9] ss:$0 sm:$0xff] }
 0x174   :  { %v630_v33 = vpack.c.bf16 %v618_v7, %v614_v6  ;;  %v798_v54 = vrot.slane %v411_v2, 2  ;;  %v795_v62 = vrot.slane %v408_v13, 2  ;;  %v796_v12 = vrot.slane %v410_v37, 2 }
 0x175   :  { %1353 = vmatmul.msk.bf16.vlgmr.msrb.gmra.mxu3 %vm68_vm1, %v628_v22  ;;  %v800_v14 = vrot.slane %v412_v38, 2  ;;  %v794_v15 = vsel %vm791_vm10, %v792_v44, %v793_v9  ;;  %v802_v1 = vrot.slane %v413_v51, 2  ;;  %v803_v63 = vrot.slane %v415_v52, 2  ;;  %1025 = vmatpush.msrb.mxu0 %v1018_v47  ;;  %v1015_v52 = vld [vmem:[%s2197_s6 + $0x48] sm:$0xff] }
 0x176   :  { %v799_v16 = vsel %vm791_vm10, %v793_v9, %v798_v54  ;;  %v797_v17 = vsel %vm791_vm10, %v795_v62, %v796_v12  ;;  %v808_v2 = vrot.slane %v417_v41, 2  ;;  %v805_v24 = vrot.slane %v414_v39, 2  ;;  %1045 = vmatpush.msra.mxu1 %v1018_v47 }
 0x177   :  { %v801_v18 = vsel %vm791_vm10, %v796_v12, %v800_v14  ;;  %v820_v21 = vpack.c.bf16 %v799_v16, %v794_v15  ;;  %v806_v27 = vrot.slane %v416_v59, 2  ;;  %v810_v29 = vrot.slane %v418_v60, 2  ;;  %1026 = vmatpush.msrb.mxu0 %v1017_v48  ;;  %v1011_v59 = vld [vmem:[%s2197_s6 + $0x28] sm:$0xff] }
 0x178   :  { %v821_v5 = vpack.c.bf16 %v801_v18, %v797_v17  ;;  %v804_v26 = vsel %vm791_vm10, %v802_v1, %v803_v63  ;;  %v809_v31 = vsel %vm791_vm10, %v803_v63, %v808_v2  ;;  %1046 = vmatpush.msra.mxu1 %v1017_v48  ;;  %v1007_v15 = vld [vmem:[%s2197_s6 + $0x8] sm:$0xff]  ;;  %v1006_v1 = vld [vmem:[%s2197_s6] sm:$0xff] }
 0x179   :  { %v807_v32 = vsel %vm791_vm10, %v805_v24, %v806_v27  ;;  %v811_v30 = vsel %vm791_vm10, %v806_v27, %v810_v29  ;;  %v822_v34 = vpack.c.bf16 %v809_v31, %v804_v26  ;;  %1027 = vmatpush.msrb.mxu0 %v1016_v50 }
 0x17a   :  { %v823_v19 = vpack.c.bf16 %v811_v30, %v807_v32  ;;  %1047 = vmatpush.msra.mxu1 %v1016_v50 }
 0x17b   :  { %554 = vmatmul.bf16.gmra.mxu0 %v422_v61 }
 0x17c   :  { %1028 = vmatpush.msrb.mxu0 %v1015_v52  ;;  %1048 = vmatpush.msra.mxu1 %v1015_v52 }
 0x17e   :  { %762 = vmatmul.bf16.gmra.mxu1 %v629_v3  ;;  %1029 = vmatpush.msrb.mxu0 %v1014_v56  ;;  %v1009_v3 = vld [vmem:[%s2197_s6 + $0x18] sm:$0xff] }
 0x17f   :  { %1049 = vmatpush.msra.mxu1 %v1014_v56 }
 0x180   :  { %1030 = vmatpush.msrb.mxu0 %v1013_v57 }
 0x181   :  { %1050 = vmatpush.msra.mxu1 %v1013_v57 }
 0x182   :  { %1273 = vmatmul.msk.bf16.gmra.mxu2 %vm68_vm1, %v423_v20  ;;  %1031 = vmatpush.msrb.mxu0 %v1012_v58  ;;  %v1008_v20 = vld [vmem:[%s2197_s6 + $0x10] sm:$0xff] }
 0x183   :  { %1051 = vmatpush.msra.mxu1 %v1012_v58  ;;  %v1083_v58 = vld [vmem:[%s2198_s7] sm:$0xff] }
 0x184   :  { %1032 = vmatpush.msrb.mxu0 %v1011_v59 }
 0x185   :  { %1354 = vmatmul.msk.bf16.gmra.mxu3 %vm68_vm1, %v630_v33  ;;  %1052 = vmatpush.msra.mxu1 %v1011_v59 }
 0x186   :  { %1033 = vmatpush.msrb.mxu0 %v1010_v10 }
 0x187   :  { %1053 = vmatpush.msra.mxu1 %v1010_v10 }
 0x188   :  { %1034 = vmatpush.msrb.mxu0 %v1009_v3 }
 0x189   :  { %1054 = vmatpush.msra.mxu1 %v1009_v3  ;;  %v1158_v3 = vld [vmem:[%s2199_s8 + $0x68] sm:$0xff] }
 0x18a   :  { %1035 = vmatpush.msrb.mxu0 %v1008_v20 }
 0x18b   :  { %1055 = vmatpush.msra.mxu1 %v1008_v20 }
 0x18c   :  { %1036 = vmatpush.msrb.mxu0 %v1007_v15 }
 0x18d   :  { %1056 = vmatpush.msra.mxu1 %v1007_v15  ;;  %v1066_v15 = vld [vmem:[%s2200_s11] sm:$0x1] }
 0x18e   :  { %1037 = vmatpush.msrb.mxu0 %v1006_v1 }
 0x18f   :  { %1057 = vmatpush.msra.mxu1 %v1006_v1 }
 0x191   :  { %1103 = vmatpush.msrb.mxu1 %v1083_v58 }
 0x192   :  { %950 = vmatmul.bf16.vlgmr.msrb.gmra.mxu2 %v820_v21 }
 0x195   :  { %1434 = vmatmul.msk.bf16.vlgmr.msra.gmra.mxu3 %vm68_vm1, %v821_v5 }
 0x1a2   :  { %955 = vmatmul.bf16.gmra.mxu2 %v822_v34 }
 0x1a5   :  { %1435 = vmatmul.msk.bf16.gmra.mxu3 %vm68_vm1, %v823_v19 }
 0x1e8   :  { %v550_v45 = vpop.f32.mrf.mxu0 }
 0x1eb   :  { %v758_v41 = vpop.f32.mrf.mxu1 }
 0x1f0   :  { %v552_v51 = vpop.f32.mrf.mxu0 }
 0x1f3   :  { %v760_v53 = vpop.f32.mrf.mxu1 }
 0x1f5   :  { %v569_v35 = vpop.f32.mrf.mxu2 }
 0x1f6   :  { %v570_v11 = vadd.f32 %v569_v35, %v550_v45 }
 0x1f8   :  { %v2023_v36 = vpop.f32.mrf.mxu3  ;;  %v555_v23 = vpop.f32.mrf.mxu0  ;;  %v582_v33 = vadd.f32 %v1480_v4, %v570_v11  ;;  %v1160_v11 = vld [vmem:[%s2199_s8 + $0x78] sm:$0xff] }
 0x1f9   :  { %v778_v9 = vadd.f32 %v2023_v36, %v758_v41  ;;  %1165 = vmatpush.msra.mxu2 %v1160_v11 }
 0x1fb   :  { %v763_v61 = vpop.f32.mrf.mxu1  ;;  %v787_v63 = vadd.f32 %v778_v9, %v582_v33  ;;  %v1154_v33 = vld [vmem:[%s2199_s8 + $0x48] sm:$0xff]  ;;  %v1153_v9 = vld [vmem:[%s2199_s8 + $0x40] sm:$0xff] }
 0x1fd   :  { %v571_v13 = vpop.f32.mrf.mxu2 }
 0x1fe   :  { %v572_v8 = vadd.f32 %v571_v13, %v552_v51 }
 0x200   :  { %v779_v37 = vpop.f32.mrf.mxu3  ;;  %v583_v6 = vadd.f32 %v1480_v4, %v572_v8  ;;  %v557_v54 = vpop.f32.mrf.mxu0 }
 0x201   :  { %v780_v7 = vadd.f32 %v779_v37, %v760_v53 }
 0x203   :  { %v788_v18 = vadd.f32 %v780_v7, %v583_v6  ;;  %v765_v2 = vpop.f32.mrf.mxu1  ;;  %v1156_v6 = vld [vmem:[%s2199_s8 + $0x58] sm:$0xff]  ;;  %v1155_v7 = vld [vmem:[%s2199_s8 + $0x50] sm:$0xff] }
 0x205   :  { %v574_v38 = vpop.f32.mrf.mxu2 }
 0x206   :  { %v575_v0 = vadd.f32 %v574_v38, %v555_v23 }
 0x208   :  { %v782_v43 = vpop.f32.mrf.mxu3  ;;  %v584_v62 = vadd.f32 %v1480_v4, %v575_v0 }
 0x209   :  { %v783_v12 = vadd.f32 %v782_v43, %v763_v61 }
 0x20b   :  { %v789_v24 = vadd.f32 %v783_v12, %v584_v62  ;;  %v1152_v62 = vld [vmem:[%s2199_s8 + $0x38] sm:$0xff] }
 0x20d   :  { %v576_v46 = vpop.f32.mrf.mxu2 }
 0x20e   :  { %v577_v16 = vadd.f32 %v576_v46, %v557_v54 }
 0x210   :  { %v2040_v49 = vpop.f32.mrf.mxu3  ;;  %v585_v29 = vadd.f32 %v1480_v4, %v577_v16  ;;  %v1159_v4 = vld [vmem:[%s2199_s8 + $0x70] sm:$0xff] }
 0x211   :  { %v785_v26 = vadd.f32 %v2040_v49, %v765_v2  ;;  %1166 = vmatpush.msra.mxu2 %v1159_v4  ;;  %v1150_v2 = vld [vmem:[%s2199_s8 + $0x28] sm:$0xff] }
 0x213   :  { %v790_v34 = vadd.f32 %v785_v26, %v585_v29  ;;  %1167 = vmatpush.msra.mxu2 %v1158_v3  ;;  %v1148_v29 = vld [vmem:[%s2199_s8 + $0x18] sm:$0xff]  ;;  %v1147_v26 = vld [vmem:[%s2199_s8 + $0x10] sm:$0xff] }
 0x215   :  { %v951_v22 = vpop.f32.mrf.mxu2 }
 0x218   :  { %v970_v55 = vpop.f32.mrf.mxu3 }
 0x219   :  { %v971_v21 = vadd.f32 %v970_v55, %v951_v22 }
 0x21b   :  { %v2082_v31 = vadd.f32 %v971_v21, %v787_v63  ;;  %v1151_v63 = vld [vmem:[%s2199_s8 + $0x30] sm:$0xff] }
 0x21d   :  { %v953_v39 = vpop.f32.mrf.mxu2  ;;  %v993_v36 = vmul.f32 %v2082_v31, %v2082_v31 }
 0x220   :  { %v972_v60 = vpop.f32.mrf.mxu3 }
 0x221   :  { %v973_v14 = vadd.f32 %v972_v60, %v953_v39 }
 0x223   :  { %v2079_v27 = vadd.f32 %v973_v14, %v788_v18 }
 0x225   :  { %v956_v44 = vpop.f32.mrf.mxu2  ;;  %v994_v30 = vmul.f32 %v2079_v27, %v2079_v27  ;;  %v984_v13 = vadd.f32 %v2079_v27, %v2082_v31 }
 0x227   :  { %v997_v40 = vadd.f32 %v994_v30, %v993_v36  ;;  %v1146_v30 = vld [vmem:[%s2199_s8 + $0x8] sm:$0xff]  ;;  %v1082_v36 = vld [vmem:[%s2200_s11 + $0x2] sm:$0x1] }
 0x228   :  { %v975_v17 = vpop.f32.mrf.mxu3  ;;  %1477 = vpush %v1082_v36 }
 0x229   :  { %v976_v5 = vadd.f32 %v975_v17, %v956_v44 }
 0x22b   :  { %v2084_v32 = vadd.f32 %v976_v5, %v789_v24  ;;  %v1079_v5 = vld [vmem:[%s2200_s11 + $0x1] sm:$0x1] }
 0x22c   :  { %v1149_v24 = vld [vmem:[%s2199_s8 + $0x20] sm:$0xff] }
 0x22d   :  { %v958_v19 = vpop.f32.mrf.mxu2  ;;  %v995_v37 = vmul.f32 %v2084_v32, %v2084_v32  ;;  %v985_v42 = vadd.f32 %v984_v13, %v2084_v32 }
 0x22f   :  { %v998_v45 = vadd.f32 %v997_v40, %v995_v37 }
 0x230   :  { %v977_v35 = vpop.f32.mrf.mxu3 }
 0x231   :  { %v978_v38 = vadd.f32 %v977_v35, %v958_v19 }
 0x233   :  { %v2095_v43 = vadd.f32 %v978_v38, %v790_v34  ;;  %v1145_v34 = vld [vmem:[%s2199_s8] sm:$0xff] }
 0x235   :  { %v986_v28 = vadd.f32 %v985_v42, %v2095_v43  ;;  %v996_v41 = vmul.f32 %v2095_v43, %v2095_v43 }
 0x237   :  { %v987_v46 = vrot.slane %v986_v28, 4  ;;  %v999_v47 = vadd.f32 %v998_v45, %v996_v41 }
 0x239   :  { %v988_v48 = vadd.f32 %v987_v46, %v986_v28  ;;  %v1000_v49 = vrot.slane %v999_v47, 4 }
 0x23b   :  { %v989_v50 = vrot.slane %v988_v48, 2  ;;  %v1001_v51 = vadd.f32 %v1000_v49, %v999_v47 }
 0x23d   :  { %v990_v52 = vadd.f32 %v989_v50, %v988_v48  ;;  %v1002_v22 = vrot.slane %v1001_v51, 2 }
 0x23f   :  { %v991_v53 = vrot.slane %v990_v52, 1  ;;  %v1003_v55 = vadd.f32 %v1002_v22, %v1001_v51 }
 0x241   :  { %v992_v56 = vadd.f32 %v991_v53, %v990_v52  ;;  %v1004_v57 = vrot.slane %v1003_v55, 1 }
 0x243   :  { %1038 = vmatmul.f32.vlgmr.msrb.gmra.mxu0 %v992_v56  ;;  %v1005_v23 = vadd.f32 %v1004_v57, %v1003_v55 }
 0x245   :  { %1058 = vmatmul.f32.vlgmr.msra.gmra.mxu1 %v1005_v23  ;;  %v1196_v23 = vld [vmem:[%s2201_s1 + $0x10] sm:$0xff] }
 0x246   :  { %1126 = vmatpush.msra.mxu1 %v1083_v58 }
 0x2c0   :  { %v1039_v39 = vpop.f32.mrf.mxu0 }
 0x2c1   :  { %v1062_v59 = vmul.f32 %v1039_v39, %v1812_v25 }
 0x2c2   :  { %v1059_v60 = vpop.f32.mrf.mxu1 }
 0x2c3   :  { %v1064_v61 = vmul.f32 %v1062_v59, %v1062_v59  ;;  %v1063_v8 = vmul.f32 %v1059_v60, %v1812_v25  ;;  %v1157_v25 = vld [vmem:[%s2199_s8 + $0x60] sm:$0xff]  ;;  %s1478_s8 = spop %1477  ;;  %v1197_v60 = vld [vmem:[%s2201_s1 + $0x18] sm:$0xff] }
 0x2c4   :  { %1168 = vmatpush.msra.mxu2 %v1157_v25 }
 0x2c5   :  { %v1065_v10 = vsub.f32 %v1063_v8, %v1064_v61 }
 0x2c6   :  { %1169 = vmatpush.msra.mxu2 %v1156_v6 }
 0x2c7   :  { %v1067_v0 = vadd.f32 1e-05, %v1065_v10 }
 0x2c8   :  { %1170 = vmatpush.msra.mxu2 %v1155_v7 }
 0x2c9   :  { %1485 = vrsqrt.f32 %v1067_v0  ;;  %vm1074_vm12 = vweird.f32 %v1067_v0 }
 0x2ca   :  { %1171 = vmatpush.msra.mxu2 %v1154_v33 }
 0x2cc   :  { %1172 = vmatpush.msra.mxu2 %v1153_v9 }
 0x2ce   :  { %1173 = vmatpush.msra.mxu2 %v1152_v62 }
 0x2cf   :  { %v1486_v20 = vpop.eup %1485 }
 0x2d0   :  { %v1069_v44 = vmul.f32 %v1486_v20, %v1067_v0  ;;  %vm1075_vm11 = vweird.f32 %v1486_v20  ;;  %1174 = vmatpush.msra.mxu2 %v1151_v63 }
 0x2d1   :  { %vm1076_vm13 = vmor %vm1074_vm12, %vm1075_vm11 }
 0x2d2   :  { %v1070_v54 = vmul.f32 %v1486_v20, %v1069_v44  ;;  %1175 = vmatpush.msra.mxu2 %v1150_v2 }
 0x2d4   :  { %v1071_v12 = vmul.f32 0.5, %v1070_v54  ;;  %1176 = vmatpush.msra.mxu2 %v1149_v24 }
 0x2d6   :  { %v1072_v14 = vsub.f32 1.5, %v1071_v12  ;;  %1177 = vmatpush.msra.mxu2 %v1148_v29 }
 0x2d8   :  { %v1073_v16 = vmul.f32 %v1486_v20, %v1072_v14  ;;  %1178 = vmatpush.msra.mxu2 %v1147_v26 }
 0x2da   :  { %v1077_v17 = vsel %vm1076_vm13, %v1486_v20, %v1073_v16  ;;  %1179 = vmatpush.msra.mxu2 %v1146_v30 }
 0x2db   :  { %v1078_v18 = vmul.f32 %v1077_v17, %v1066_v15 }
 0x2dc   :  { %1180 = vmatpush.msra.mxu2 %v1145_v34 }
 0x2dd   :  { %1436 = vmatmul.msk.f32.vlgmr.msrb.gmra.mxu1 %vm1084_vm14, %v1078_v18  ;;  %v1080_v21 = vmul.f32 %v1078_v18, %v1062_v59 }
 0x2df   :  { %v1081_v1 = vsub.f32 %v1079_v5, %v1080_v21 }
 0x2e5   :  { %1437 = vmatmul.msk.f32.vlgmr.msra.gmra.mxu1 %vm1084_vm14, %v1081_v1 }
 0x35a   :  { %v1105_v19 = vpop.f32.mrf.mxu1 }
 0x35b   :  { %v1131_v35 = vperm.slane %v1105_v19, 0 }
 0x35d   :  { %v1132_v37 = vmul.f32 %v1131_v35, %v2082_v31  ;;  %v1133_v45 = vmul.f32 %v1131_v35, %v2079_v27  ;;  %v1134_v46 = vmul.f32 %v1131_v35, %v2084_v32  ;;  %v1135_v49 = vmul.f32 %v1131_v35, %v2095_v43  ;;  %v1194_v27 = vld [vmem:[%s2201_s1] sm:$0xff]  ;;  %v1195_v43 = vld [vmem:[%s2201_s1 + $0x8] sm:$0xff] }
 0x35e   :  { %v1163_v31 = vstv %s1478_s8 }
 0x362   :  { %v1128_v13 = vpop.f32.mrf.mxu1 }
 0x363   :  { %v1136_v38 = vperm.slane %v1128_v13, 0 }
 0x365   :  { %v1137_v40 = vadd.f32 %v1136_v38, %v1132_v37  ;;  %v1138_v28 = vadd.f32 %v1136_v38, %v1133_v45  ;;  %v1139_v47 = vadd.f32 %v1136_v38, %v1134_v46  ;;  %v1140_v50 = vadd.f32 %v1136_v38, %v1135_v49 }
 0x367   :  { %v1141_v42 = vmax.f32 %v1137_v40, 0.0  ;;  %v1142_v41 = vmax.f32 %v1138_v28, 0.0  ;;  %v1143_v48 = vmax.f32 %v1139_v47, 0.0  ;;  %v1144_v51 = vmax.f32 %v1140_v50, 0.0 }
 0x369   :  { %1181 = vmatmul.f32.vlgmr.msra.gmra.mxu2 %v1141_v42 }
 0x371   :  { %1184 = vmatmul.f32.gmra.mxu2 %v1142_v41 }
 0x379   :  { %1187 = vmatmul.f32.gmra.mxu2 %v1143_v48 }
 0x381   :  { %1190 = vmatmul.f32.gmra.mxu2 %v1144_v51 }
 0x3ec   :  { %v1182_v52 = vpop.f32.mrf.mxu2 }
 0x3ed   :  { %v1183_v22 = vadd.f32 %v1182_v52, %v1163_v31 }
 0x3ef   :  { %v1198_v53 = vmul.f32 %v1194_v27, %v1183_v22 }
 0x3f1   :  { %1202 = vst [vmem:[%s2202_s12] sm:$0xff] %v1198_v53 }
 0x3f4   :  { %v1185_v32 = vpop.f32.mrf.mxu2 }
 0x3f5   :  { %v1186_v55 = vadd.f32 %v1185_v32, %v1163_v31 }
 0x3f7   :  { %v1199_v56 = vmul.f32 %v1195_v43, %v1186_v55 }
 0x3f9   :  { %1203 = vst [vmem:[%s2202_s12 + $0x8] sm:$0xff] %v1199_v56 }
 0x3fc   :  { %v1188_v57 = vpop.f32.mrf.mxu2 }
 0x3fd   :  { %v1189_v58 = vadd.f32 %v1188_v57, %v1163_v31 }
 0x3ff   :  { %v1200_v39 = vmul.f32 %v1196_v23, %v1189_v58 }
 0x401   :  { %1204 = vst [vmem:[%s2202_s12 + $0x10] sm:$0xff] %v1200_v39 }
 0x404   :  { %v1191_v59 = vpop.f32.mrf.mxu2 }
 0x405   :  { %v1192_v61 = vadd.f32 %v1191_v59, %v1163_v31 }
 0x407   :  { %v1201_v8 = vmul.f32 %v1197_v60, %v1192_v61 }
 0x409   :  { %1205 = vst [vmem:[%s2202_s12 + $0x18] sm:$0xff] %v1201_v8 }

</bundles_post_ra>
